<compile_context>
chip_gen: v7x
topology: tpu7x:2x2x1
jax: 0.10.0
libtpu: 0.0.40
codegen_flags: <defaults>
</compile_context>

<pallas_src>
import functools

import jax
import jax.numpy as jnp
from jax.experimental import pallas as pl
from jax.experimental.pallas import tpu as pltpu


def _round_up(x, m):
    return ((x + m - 1) // m) * m


def _sublane_packing(dtype):
    """Minimum second-to-last tile dim for the dtype (f32:8, bf16:16, i8:32)."""
    itemsize = jnp.dtype(dtype).itemsize
    return max(8, 32 // itemsize)


# --------------------- single-pass kernel (full row of T in one block) ------
def _adl_kernel(atn_ref, drop_ref, *, drop_thres, include_min):
    atn = atn_ref[...]                                   # (rows_tile, T_pad)
    atn_max = jnp.max(atn, axis=-1, keepdims=True)       # cross-lane reduce
    if include_min:
        atn_min = jnp.min(atn, axis=-1, keepdims=True)
        thres = (atn_max - atn_min) * drop_thres + atn_min
    else:
        thres = atn_max * drop_thres
    drop_ref[...] = jnp.where(atn < thres, atn, 0).astype(drop_ref.dtype)


# --------------------- two-pass kernels (T tiled; very large T only) --------
def _thres_kernel(atn_ref, thres_ref, max_sc, min_sc, *, drop_thres, include_min):
    j = pl.program_id(1)
    atn = atn_ref[...]                                   # (rows_tile, t_tile)
    blk_max = jnp.max(atn, axis=-1, keepdims=True)
    blk_min = jnp.min(atn, axis=-1, keepdims=True) if include_min else None

    @pl.when(j == 0)
    def _():
        max_sc[...] = blk_max
        if include_min:
            min_sc[...] = blk_min

    @pl.when(j > 0)
    def _():
        max_sc[...] = jnp.maximum(max_sc[...], blk_max)
        if include_min:
            min_sc[...] = jnp.minimum(min_sc[...], blk_min)

    @pl.when(j == pl.num_programs(1) - 1)
    def _():
        if include_min:
            thres = (max_sc[...] - min_sc[...]) * drop_thres + min_sc[...]
        else:
            thres = max_sc[...] * drop_thres
        thres_ref[...] = thres.astype(thres_ref.dtype)


def _apply_kernel(thres_ref, atn_ref, drop_ref):
    atn = atn_ref[...]
    drop_ref[...] = jnp.where(atn < thres_ref[...], atn, 0).astype(drop_ref.dtype)


# --------------------- wrapper -----------------------------------------------
def adl_forward(x, x_atn, *, drop_thres=0.5, drop_prob=0.5, include_min=False,
                training=True, max_block_bytes=None, vmem_limit_bytes=48 << 20):
    """Pallas implementation of ADL.forward.

    x, x_atn: (B, C, T).  Returns (mask_imp, drop_mask).
    drop_prob is unused in the forward math (kept for interface parity).
    max_block_bytes: combined (input+output) byte budget per grid step;
    exposed mainly so tests can force the two-pass (large-T) path.
    """
    del drop_prob  # not used by the reference forward pass
    if not training:
        return x_atn, x_atn

    B, C, T = x_atn.shape
    rows = B * C
    atn2d = x_atn.reshape(rows, T)

    # PyTorch: (x_atn < thres).type_as(x) * x_atn  -> promoted dtype.
    out_dtype = jnp.result_type(x.dtype, x_atn.dtype)

    sublane = _sublane_packing(x_atn.dtype)
    comb = jnp.dtype(x_atn.dtype).itemsize + jnp.dtype(out_dtype).itemsize

    if max_block_bytes is None:
        # ~8 MiB combined (in + out) per grid step: big enough to sit at the
        # HBM roofline on v5e/v6e/v7x, small enough that double-buffered
        # in + out (~2x) stays inside the raised scoped-VMEM limit below.
        max_block_bytes = 8 * 1024 * 1024

    rows_rounded = _round_up(rows, sublane)
    T_pad128 = _round_up(T, 128)   # lane-dense stores (edge-padded if needed)

    def _cparams(sem):
        return pltpu.CompilerParams(dimension_semantics=sem,
                                    vmem_limit_bytes=vmem_limit_bytes)

    kernel_kw = dict(drop_thres=float(drop_thres), include_min=bool(include_min))
    single_pass = sublane * T_pad128 * comb <= max_block_bytes

    if single_pass:
        T_pad = T_pad128
        # rows_tile: (a) fit the per-step byte budget, (b) keep >= ~8 grid
        # steps so the pipeline overlaps DMA/compute and, on v7x, both
        # TensorCores get work (instead of a degenerate grid == 1 launch).
        rows_budget = max(sublane,
                          (max_block_bytes // max(1, T_pad * comb))
                          // sublane * sublane)
        rows_cap = max(sublane, _round_up(pl.cdiv(rows_rounded, 8), sublane))
        rows_tile = min(rows_budget, rows_cap, rows_rounded)

        atn2d_p = (jnp.pad(atn2d, ((0, 0), (0, T_pad - T)), mode="edge")
                   if T_pad != T else atn2d)

        drop2d = pl.pallas_call(
            functools.partial(_adl_kernel, **kernel_kw),
            out_shape=jax.ShapeDtypeStruct((rows, T_pad), out_dtype),
            grid_spec=pltpu.PrefetchScalarGridSpec(
                num_scalar_prefetch=0,
                grid=(pl.cdiv(rows, rows_tile),),
                in_specs=[pl.BlockSpec((rows_tile, T_pad), lambda i: (i, 0))],
                out_specs=pl.BlockSpec((rows_tile, T_pad), lambda i: (i, 0)),
            ),
            compiler_params=_cparams(("parallel",)),
        )(atn2d_p)
    else:
        # Very large T: two passes with T tiled so no block (and its double
        # buffers) can overflow scoped/physical VMEM.
        t_tile = min(T_pad128,
                     max(128, (max_block_bytes // max(1, sublane * comb))
                         // 128 * 128))
        # Pad T to an exact multiple of t_tile (edge replication preserves
        # per-row max and min), so no ragged lane block feeds the reduction.
        T_pad = _round_up(T, t_tile)
        rows_budget = max(sublane,
                          (max_block_bytes // max(1, t_tile * comb))
                          // sublane * sublane)
        rows_tile = min(rows_budget, rows_rounded)

        atn2d_p = (jnp.pad(atn2d, ((0, 0), (0, T_pad - T)), mode="edge")
                   if T_pad != T else atn2d)

        n_i = pl.cdiv(rows, rows_tile)
        n_j = T_pad // t_tile

        # Pass 1: per-row threshold (running max / min over T tiles).
        thres = pl.pallas_call(
            functools.partial(_thres_kernel, **kernel_kw),
            out_shape=jax.ShapeDtypeStruct((rows, 1), x_atn.dtype),
            grid_spec=pltpu.PrefetchScalarGridSpec(
                num_scalar_prefetch=0,
                grid=(n_i, n_j),
                in_specs=[pl.BlockSpec((rows_tile, t_tile), lambda i, j: (i, j))],
                out_specs=pl.BlockSpec((rows_tile, 1), lambda i, j: (i, 0)),
                scratch_shapes=[pltpu.VMEM((rows_tile, 1), x_atn.dtype),
                                pltpu.VMEM((rows_tile, 1), x_atn.dtype)],
            ),
            compiler_params=_cparams(("parallel", "arbitrary")),
        )(atn2d_p)

        # Pass 2: thresholded select, fully parallel over rows and T tiles.
        drop2d = pl.pallas_call(
            _apply_kernel,
            out_shape=jax.ShapeDtypeStruct((rows, T_pad), out_dtype),
            grid_spec=pltpu.PrefetchScalarGridSpec(
                num_scalar_prefetch=0,
                grid=(n_i, n_j),
                in_specs=[pl.BlockSpec((rows_tile, 1), lambda i, j: (i, 0)),
                          pl.BlockSpec((rows_tile, t_tile), lambda i, j: (i, j))],
                out_specs=pl.BlockSpec((rows_tile, t_tile), lambda i, j: (i, j)),
            ),
            compiler_params=_cparams(("parallel", "parallel")),
        )(thres, atn2d_p)

    if T_pad != T:
        drop2d = drop2d[:, :T]

    # mask_imp is just x_atn (no kernel output, no copy).
    return x_atn, drop2d.reshape(B, C, T)


# --------------------- pure-JAX reference ------------------------------------
def _adl_reference(x, x_atn, drop_thres=0.5, include_min=False):
    """Mirrors the PyTorch code (training mode)."""
    mask_imp = x_atn
    atn_max = jnp.max(x_atn, axis=-1, keepdims=True)
    if include_min:
        atn_min = jnp.min(x_atn, axis=-1, keepdims=True)
        thres = (atn_max - atn_min) * drop_thres + atn_min
    else:
        thres = atn_max * drop_thres
    drop_mask = (x_atn < thres).astype(x.dtype) * x_atn
    return mask_imp, drop_mask


if __name__ == "__main__":
    key = jax.random.PRNGKey(0)
    k1, k2, k3, k4, k5, k6 = jax.random.split(key, 6)
    ok = True

    # ---- f32, T multiple of 128 (single-pass path): B=2, C=4, T=128 --------
    B, C, T = 2, 4, 128
    x = jax.random.normal(k1, (B, C, T), dtype=jnp.float32)
    x_atn = jax.nn.sigmoid(jax.random.normal(k2, (B, C, T), dtype=jnp.float32))
    for include_min in (False, True):
        mi, dm = adl_forward(x, x_atn, drop_thres=0.5,
                             include_min=include_min, training=True)
        jax.block_until_ready(dm)
        ri, rd = _adl_reference(x, x_atn, 0.5, include_min)
        ok &= bool(jnp.allclose(mi, ri, atol=1e-6))
        ok &= bool(jnp.allclose(dm, rd, atol=1e-6))

    # ---- bf16 (dtype-aware sublane tiling): B=2, C=8, T=128 ----------------
    Bb, Cb, Tb = 2, 8, 128
    xb = jax.random.normal(k3, (Bb, Cb, Tb), dtype=jnp.bfloat16)
    xab = jax.nn.sigmoid(
        jax.random.normal(k4, (Bb, Cb, Tb), dtype=jnp.float32)).astype(jnp.bfloat16)
    mi_b, dm_b = adl_forward(xb, xab, drop_thres=0.5, include_min=False,
                             training=True)
    jax.block_until_ready(dm_b)
    ri_b, rd_b = _adl_reference(xb, xab, 0.5, False)
    ok &= bool(jnp.allclose(mi_b.astype(jnp.float32), ri_b.astype(jnp.float32)))
    ok &= bool(jnp.allclose(dm_b.astype(jnp.float32), rd_b.astype(jnp.float32),
                            atol=1e-2))

    # ---- ragged rows + T not multiple of 128 (edge-pad path): B=2,C=5,T=100 -
    Br, Cr, Tr = 2, 5, 100
    xr = jax.random.normal(k5, (Br, Cr, Tr), dtype=jnp.float32)
    xar = jax.nn.sigmoid(jax.random.normal(k6, (Br, Cr, Tr), dtype=jnp.float32))
    for include_min in (False, True):
        mi_r, dm_r = adl_forward(xr, xar, drop_thres=0.5,
                                 include_min=include_min, training=True)
        jax.block_until_ready(dm_r)
        ri_r, rd_r = _adl_reference(xr, xar, 0.5, include_min)
        ok &= bool(jnp.allclose(mi_r, ri_r, atol=1e-6))
        ok &= bool(jnp.allclose(dm_r, rd_r, atol=1e-6))

    # ---- forced two-pass (large-T fallback) on a small shape: T=384 ---------
    Bt, Ct, Tt = 2, 4, 384
    xt = jax.random.normal(k1, (Bt, Ct, Tt), dtype=jnp.float32)
    xat = jax.nn.sigmoid(jax.random.normal(k2, (Bt, Ct, Tt), dtype=jnp.float32))
    for include_min in (False, True):
        mi_t, dm_t = adl_forward(xt, xat, drop_thres=0.5,
                                 include_min=include_min, training=True,
                                 max_block_bytes=16 * 1024)   # force T tiling
        jax.block_until_ready(dm_t)
        ri_t, rd_t = _adl_reference(xt, xat, 0.5, include_min)
        ok &= bool(jnp.allclose(mi_t, ri_t, atol=1e-6))
        ok &= bool(jnp.allclose(dm_t, rd_t, atol=1e-6))

    # ---- eval-mode path (no kernel): returns (x_atn, x_atn) -----------------
    e1, e2 = adl_forward(x, x_atn, training=False)
    ok &= bool(jnp.allclose(e1, x_atn)) and bool(jnp.allclose(e2, x_atn))

    if ok:
        print("KERNEL_OK")
    else:
        raise SystemExit("mismatch vs reference")
</pallas_src>

<mosaic_0001>
module attributes {stable_mosaic.version = 11 : i64} {
  func.func @_adl_kernel(%arg0: i32, %arg1: memref<8x128xf32, #tpu.memory_space<vmem>>, %arg2: memref<8x128xf32, #tpu.memory_space<vmem>>) attributes {dimension_semantics = [#tpu.dimension_semantics<parallel>], iteration_bounds = array<i64: 1>, scalar_prefetch = 0 : i64, scratch_operands = 0 : i64, tpu.core_type = #tpu.core_type<tc>, window_params = [{transform_indices = @transform_0, window_bounds = array<i64: 8, 128>}, {transform_indices = @transform_1, window_bounds = array<i64: 8, 128>}]} {
    %c0 = arith.constant 0 : index
    %c0_0 = arith.constant 0 : index
    %0 = vector.load %arg1[%c0, %c0_0] : memref<8x128xf32, #tpu.memory_space<vmem>>, vector<8x128xf32>
    %cst = arith.constant dense<0xFF800000> : vector<8xf32>
    %1 = vector.multi_reduction <maximumf>, %0, %cst [1] : vector<8x128xf32> to vector<8xf32>
    %2 = vector.shape_cast %1 : vector<8xf32> to vector<8x1xf32>
    %cst_1 = arith.constant 5.000000e-01 : f32
    %3 = vector.broadcast %cst_1 : f32 to vector<8x1xf32>
    %4 = arith.mulf %2, %3 : vector<8x1xf32>
    %5 = vector.broadcast %4 : vector<8x1xf32> to vector<8x128xf32>
    %6 = arith.cmpf olt, %0, %5 : vector<8x128xf32>
    %c0_i32 = arith.constant 0 : i32
    %7 = arith.sitofp %c0_i32 : i32 to f32
    %8 = vector.broadcast %7 : f32 to vector<8x128xf32>
    %9 = arith.select %6, %0, %8 : vector<8x128xi1>, vector<8x128xf32>
    %c0_2 = arith.constant 0 : index
    %c0_3 = arith.constant 0 : index
    %10 = vector.load %arg2[%c0_2, %c0_3] : memref<8x128xf32, #tpu.memory_space<vmem>>, vector<8x128xf32>
    tpu.vector_store %arg2[%c0_2, %c0_3], %9 {strides = array<i32>} : memref<8x128xf32, #tpu.memory_space<vmem>>, vector<8x128xf32>,
    return
  }
  func.func @transform_0(%arg0: i32) -> (i32, i32) {
    %c0_i32 = arith.constant 0 : i32
    %c0_i32_0 = arith.constant 0 : i32
    return %arg0, %c0_i32 : i32, i32
  }
  func.func @transform_1(%arg0: i32) -> (i32, i32) {
    %c0_i32 = arith.constant 0 : i32
    %c0_i32_0 = arith.constant 0 : i32
    return %arg0, %c0_i32 : i32, i32
  }
}

</mosaic_0001>

<bundles_post_ra>
// kernel: tpu_custom_call.1
= control target key start
LH: loop header
LB: loop body
LE: loop exit
PB: predicated region body
PF: predicated region fallthrough
CT: control target
= control target key end

     0   :  { %6 = vsyncpa [#allocation3], 0  ;;  %s129_s0 = inlined_call_operand.hbm [shape: f32[8,128], index: 0, kind: input, shape index: {}]   ;;  %s130_s1 = inlined_call_operand.hbm [shape: f32[8,128], index: 1, kind: output, shape index: {}]  }
   0x1   :  { %7 = vsyncpa [#allocation4], 0  ;;  %s93_s6 = smov [#allocation2]   ;;  %s45_s10 = scalar_lea.hbm %s129_s0, 128 }
   0x2   :  { %s14_s7 = sshll.u32 %s93_s6, 4  ;;  %p46_p0 = scmp.ne.s32.totalorder %s129_s0, %s45_s10  ;;  %s15_s7 = int_to_ptr.vmem [resolvable:$true] %s14_s7 }
   0x3   :  { %p49_p1 = scmp.lt.u32.totalorder %s45_s10, %s129_s0 }
   0x5   :  { %p51_p2 = pnand %p49_p1, %p46_p0 }
   0x7   :  { %54 = shalt.err (!%p51_p2)
}
   0x8   :  { %s55_s15 = scalar_lea.vmem %s15_s7, 128  ;;  %p60_p4 = scmp.lt.s32.totalorder %s15_s7, %s15_s7 }
   0x9   :  { %p56_p3 = scmp.ne.s32.totalorder %s15_s7, %s55_s15  ;;  %p61_p5 = scmp.lt.s32.totalorder %s55_s15, %s55_s15 }
   0xb   :  { %p62_p6 = por %p61_p5, %p60_p4 }
   0xd   :  { %p63_p7 = pnand %p62_p6, %p56_p3 }
   0xf   :  { %66 = shalt.err (!%p63_p7)
}
  0x10   :  { %17 = dma.hbm_to_vmem [thread:$0]  %s129_s0, 128, %s15_s7, [#allocation3]  }
  0x11   :  { %89 = dma.done.wait [#allocation3], 128  }
  0x12   :  { %90 = vsyncadd [#allocation3], 4294967168  ;;  %v21_v0 = vld [vmem:[#allocation2] sm:$0xff]  ;;  %s94_s18 = smov [#allocation5]  }
  0x13   :  { %22 = vmax.xlane.f32.xlu0 %v21_v0  ;;  %s34_s19 = sshll.u32 %s94_s18, 4  ;;  %s35_s19 = int_to_ptr.vmem [resolvable:$true] %s34_s19 }
  0x14   :  { %s67_s20 = scalar_lea.vmem %s35_s19, 128  ;;  %p72_p9 = scmp.lt.s32.totalorder %s35_s19, %s35_s19 }
  0x15   :  { %p68_p8 = scmp.ne.s32.totalorder %s35_s19, %s67_s20  ;;  %p73_p10 = scmp.lt.s32.totalorder %s67_s20, %s67_s20 }
  0x17   :  { %p74_p11 = por %p73_p10, %p72_p9 }
  0x19   :  { %p75_p12 = pnand %p74_p11, %p68_p8 }
  0xa0   :  { %v23_v1 = vpop.xlane.xlu0 %22 }
  0xa1   :  { %v24_v2 = vmul.f32 0.5, %v23_v1 }
  0xa3   :  { %vm25_vm0 = vcmp.lt.f32.partialorder %v21_v0, %v24_v2 }
  0xa4   :  { %v26_v3 = vsel %vm25_vm0, %v21_v0, 0.0 }
  0xa5   :  { %27 = vst [vmem:[#allocation5] sm:$0xff] %v26_v3 }
  0xa6   :  { %78 = shalt.err (!%p75_p12)
}
  0xa7   :  { %s79_s22 = scalar_lea.hbm %s130_s1, 128 }
  0xa8   :  { %p80_p13 = scmp.ne.s32.totalorder %s130_s1, %s79_s22  ;;  %p83_p0 = scmp.lt.u32.totalorder %s79_s22, %s130_s1 }
  0xaa   :  { %p85_p1 = pnand %p83_p0, %p80_p13 }
  0xac   :  { %88 = shalt.err (!%p85_p1)
}
  0xad   :  { %37 = dma.vmem_to_hbm [thread:$0]  %s35_s19, 128, %s130_s1, [#allocation4]  }
  0xae   :  { %91 = dma.done.wait [#allocation4], 128  }
  0xaf   :  { %92 = vsyncadd [#allocation4], 4294967168 }
  0xb0   :  { %41 = vsyncpa [#allocation3], 1 }
  0xb1   :  { %42 = vsyncpa [#allocation4], 1 }

</bundles_post_ra>
